<compile_context>
chip_gen: v6e
topology: v6e:2x2x1
jax: 0.10.0
libtpu: 0.0.40
codegen_flags: <defaults>
</compile_context>

<pallas_src>
import jax
import jax.numpy as jnp
from jax.experimental import pallas as pl
from jax.experimental.pallas import tpu as pltpu


def _round_up(x, m):
    return (x + m - 1) // m * m


def _cdiv(a, b):
    return (a + b - 1) // b


def _text_sse_packed_kernel(x_ref, wp_ref, bp_ref, wcp_ref, bc_ref, y_ref):
    """Fused path: one MXU matmul per batch tile.

    x_ref  : (TB, S*E)   per-sample tokens concatenated along lanes
    wp_ref : (S*E, S*H)  block-diagonal reduce_dim weight
    bp_ref : (1, S*H)    reduce_dim bias tiled per token
    wcp_ref: (1, S*H)    classifier row (already scaled by 1/S) tiled per token
    bc_ref : (1, 1)      classifier bias
    y_ref  : (TB, 1)     output logits
    """
    f32 = jnp.float32
    # Single MXU matmul with K = S*E, N = S*H.
    pre = jnp.dot(x_ref[...], wp_ref[...], preferred_element_type=f32) + bp_ref[...]
    h = jnp.maximum(pre, 0.0)                       # per-token ReLU, (TB, S*H)
    # mean-over-tokens + classifier fused into one VPU multiply + lane reduce
    y_ref[...] = jnp.sum(h * wcp_ref[...], axis=-1, keepdims=True) + bc_ref[...]


def _text_sse_loop_kernel(x_ref, wr_ref, br_ref, wc_ref, bc_ref, y_ref):
    """Fallback path (large packed weight): unrolled per-token matmuls.

    x_ref : (TB, S*E), wr_ref: (E, H), br_ref: (1, H),
    wc_ref: (1, H) (already scaled by 1/S), bc_ref: (1, 1), y_ref: (TB, 1).
    """
    f32 = jnp.float32
    E, H = wr_ref.shape
    S = x_ref.shape[1] // E
    TB = x_ref.shape[0]
    # Hoist parameter reads out of the (static, unrolled) token loop.
    wr = wr_ref[...]
    br = br_ref[...]
    wc = wc_ref[...]
    acc = jnp.zeros((TB, H), f32)
    for s in range(S):                              # S is small and static
        xs = x_ref[:, s * E:(s + 1) * E]            # static lane slice, (TB, E)
        acc = acc + jnp.maximum(
            jnp.dot(xs, wr, preferred_element_type=f32) + br, 0.0)
    y_ref[...] = jnp.sum(acc * wc, axis=-1, keepdims=True) + bc_ref[...]


def text_sse_forward(x_txt, params, *, block_b=None, vmem_limit_bytes=None):
    """Runs Text_SSE.forward via a batch-tiled Pallas kernel.

    x_txt : (B, S, E) float32
    params: dict with wr (E,H), br (1,H), wc (1,H), bc (1,1)
    returns (B, 1) float32 logits
    """
    assert x_txt.ndim == 3, "Text_SSE forward requires a (batch, seq, embed) input"
    B, S, E = x_txt.shape
    H = params["wr"].shape[1]
    f32 = jnp.float32

    # Free row-major view: no transpose, no pad, no extra HBM traffic.
    x2 = x_txt.reshape(B, S * E)

    # Fold the token-mean 1/S factor into the classifier row.
    wc_scaled = params["wc"].astype(f32) * (1.0 / S)

    # Fused (block-diagonal) path unless the packed weight would be large.
    packed_bytes = (S * E) * (S * H) * 4
    use_packed = (packed_bytes <= 4 * 1024 * 1024) and (S * H <= 512)
    weight_bytes = packed_bytes if use_packed else E * H * 4

    # Per-generation VMEM budget (v7x: 64 MiB, v5e/v6e: 128 MiB physical).
    try:
        vmem_cap = int(pltpu.get_tpu_info().vmem_capacity_bytes)
    except Exception:
        vmem_cap = 64 * 1024 * 1024                  # v7x-conservative fallback
    if vmem_limit_bytes is None:
        vmem_limit_bytes = vmem_cap * 3 // 4

    # Tile sizing from the VMEM budget (accounting for 128-lane padding):
    # two double-buffered x blocks plus ~3 hidden-sized live temporaries.
    lane = 128
    x_row_bytes = _round_up(S * E, lane) * 4
    h_row_bytes = _round_up(S * H if use_packed else H, lane) * 4
    row_cost = 2 * x_row_bytes + 3 * h_row_bytes
    usable = max(row_cost * 8, int(0.8 * vmem_limit_bytes) - 4 * weight_bytes)
    tb_vmem = max(8, usable // row_cost)

    # Keep >= 8 grid steps for large batches so the pipeline can overlap DMA
    # with compute and the "parallel" axis actually splits across v7x's 2 TCs.
    MIN_STEPS = 8
    tb_grid = max(8, _cdiv(B, MIN_STEPS))
    if block_b is None:
        block_b = min(tb_vmem, tb_grid)
    TB = max(8, (min(block_b, tb_vmem) // 8) * 8)    # multiple of 8 sublanes
    TB = min(TB, _round_up(B, 8))
    grid = (_cdiv(B, TB),)

    if use_packed:
        wr32 = params["wr"].astype(f32)
        wp = jnp.kron(jnp.eye(S, dtype=f32), wr32)            # (S*E, S*H)
        bp = jnp.tile(params["br"].astype(f32), (1, S))       # (1, S*H)
        wcp = jnp.tile(wc_scaled, (1, S))                     # (1, S*H)
        kernel = _text_sse_packed_kernel
        w_args = (wp, bp, wcp)
        w_specs = [
            pl.BlockSpec((S * E, S * H), lambda i: (0, 0)),
            pl.BlockSpec((1, S * H), lambda i: (0, 0)),
            pl.BlockSpec((1, S * H), lambda i: (0, 0)),
        ]
    else:
        kernel = _text_sse_loop_kernel
        w_args = (params["wr"].astype(f32), params["br"].astype(f32), wc_scaled)
        w_specs = [
            pl.BlockSpec((E, H), lambda i: (0, 0)),
            pl.BlockSpec((1, H), lambda i: (0, 0)),
            pl.BlockSpec((1, H), lambda i: (0, 0)),
        ]

    flops = 2 * B * S * E * H + 3 * B * S * H + 2 * B
    bytes_accessed = 4 * (B * S * E + B) + weight_bytes + 4 * (2 * S * H + 1)

    out = pl.pallas_call(
        kernel,
        out_shape=jax.ShapeDtypeStruct((B, 1), f32),
        grid_spec=pltpu.PrefetchScalarGridSpec(
            num_scalar_prefetch=0,
            grid=grid,
            in_specs=[
                # Activations: tiled over the batch, auto double-buffered.
                # NOTE: the last (ragged) block may read out-of-bounds rows;
                # rows are independent and those outputs are masked, so this is
                # safe — do not add cross-row reductions without masking.
                pl.BlockSpec((TB, S * E), lambda i: (i, 0)),
            ] + w_specs + [
                pl.BlockSpec((1, 1), lambda i: (0, 0)),
            ],
            out_specs=pl.BlockSpec((TB, 1), lambda i: (i, 0)),
        ),
        compiler_params=pltpu.CompilerParams(
            # Batch tiles are independent -> shard across TensorCores.
            dimension_semantics=("parallel",),
            vmem_limit_bytes=int(vmem_limit_bytes),
        ),
        cost_estimate=pl.CostEstimate(
            flops=int(flops), transcendentals=0,
            bytes_accessed=int(bytes_accessed)),
    )(x2, *w_args, params["bc"].astype(f32))

    return out


def init_params(key, txt_embed_size, hidden_size):
    """Deterministic synthetic parameters matching the module's __init__ shapes."""
    H = hidden_size
    k = jax.random.split(key, 4)
    # reduce_dim: nn.Linear(txt_embed_size, H); stored pre-transposed (in, out).
    wr = jax.random.normal(k[0], (txt_embed_size, H), jnp.float32) / jnp.sqrt(
        float(txt_embed_size))
    br = jax.random.normal(k[1], (1, H), jnp.float32) * 0.01
    # classifier: nn.Linear(H, 1); weight stored as a (1, H) row.
    wc = jax.random.normal(k[2], (1, H), jnp.float32) / jnp.sqrt(float(H))
    bc = jax.random.normal(k[3], (1, 1), jnp.float32) * 0.01
    return dict(wr=wr, br=br, wc=wc, bc=bc)


def reference_forward(x_txt, p):
    """Pure-JAX reference mirroring the PyTorch forward (eval mode)."""
    hp = jax.lax.Precision.HIGHEST
    h = jax.nn.relu(jnp.einsum("bse,eh->bsh", x_txt, p["wr"], precision=hp) + p["br"])
    h_bar = jnp.mean(h, axis=1)            # dropout = identity in eval mode
    return jnp.dot(h_bar, p["wc"].T, precision=hp) + p["bc"]


if __name__ == "__main__":
    # Small shapes consistent with the module: batch=8, seq=4, txt_embed=64,
    # hidden_size=32.
    B, S, TXT_E, HID = 8, 4, 64, 32

    key = jax.random.PRNGKey(0)
    kx, kp = jax.random.split(key)
    x_txt = jax.random.normal(kx, (B, S, TXT_E), jnp.float32)
    params = init_params(kp, TXT_E, HID)

    y = text_sse_forward(x_txt, params)
    y = jax.block_until_ready(y)

    y_ref = reference_forward(x_txt, params)
    assert y.shape == (B, 1)
    assert jnp.allclose(y, y_ref, atol=1e-4, rtol=1e-4), (y, y_ref)

    print("KERNEL_OK")
</pallas_src>

<mosaic_0001>
module attributes {stable_mosaic.version = 11 : i64} {
  func.func @_text_sse_packed_kernel(%arg0: i32, %arg1: memref<8x256xf32, #tpu.memory_space<vmem>>, %arg2: memref<256x128xf32, #tpu.memory_space<vmem>>, %arg3: memref<1x128xf32, #tpu.memory_space<vmem>>, %arg4: memref<1x128xf32, #tpu.memory_space<vmem>>, %arg5: memref<1x1xf32, #tpu.memory_space<vmem>>, %arg6: memref<8x1xf32, #tpu.memory_space<vmem>>) attributes {dimension_semantics = [#tpu.dimension_semantics<parallel>], iteration_bounds = array<i64: 1>, scalar_prefetch = 0 : i64, scratch_operands = 0 : i64, tpu.core_type = #tpu.core_type<tc>, window_params = [{transform_indices = @transform_0, window_bounds = array<i64: 8, 256>}, {pipeline_mode = #tpu.pipeline_mode<synchronous>, transform_indices = @transform_1, window_bounds = array<i64: 256, 128>}, {pipeline_mode = #tpu.pipeline_mode<synchronous>, transform_indices = @transform_2, window_bounds = array<i64: 1, 128>}, {pipeline_mode = #tpu.pipeline_mode<synchronous>, transform_indices = @transform_3, window_bounds = array<i64: 1, 128>}, {pipeline_mode = #tpu.pipeline_mode<synchronous>, transform_indices = @transform_4, window_bounds = array<i64: 1, 1>}, {transform_indices = @transform_5, window_bounds = array<i64: 8, 1>}]} {
    %c0 = arith.constant 0 : index
    %c0_0 = arith.constant 0 : index
    %0 = vector.load %arg1[%c0, %c0_0] : memref<8x256xf32, #tpu.memory_space<vmem>>, vector<8x256xf32>
    %c0_1 = arith.constant 0 : index
    %c0_2 = arith.constant 0 : index
    %1 = vector.load %arg2[%c0_1, %c0_2] : memref<256x128xf32, #tpu.memory_space<vmem>>, vector<256x128xf32>
    %cst = arith.constant dense<0.000000e+00> : vector<8x128xf32>
    %2 = tpu.matmul %0, %1, %cst {dimension_numbers = #tpu.dot_dimension_numbers<[1], [0], [0], [1], [0, 0, 1, 1], [], []>} : vector<8x256xf32>, vector<256x128xf32>, vector<8x128xf32> -> vector<8x128xf32>
    %c0_3 = arith.constant 0 : index
    %c0_4 = arith.constant 0 : index
    %3 = vector.load %arg3[%c0_3, %c0_4] : memref<1x128xf32, #tpu.memory_space<vmem>>, vector<1x128xf32>
    %4 = vector.broadcast %3 : vector<1x128xf32> to vector<8x128xf32>
    %5 = arith.addf %2, %4 : vector<8x128xf32>
    %cst_5 = arith.constant 0.000000e+00 : f32
    %6 = vector.broadcast %cst_5 : f32 to vector<8x128xf32>
    %7 = arith.maximumf %5, %6 : vector<8x128xf32>
    %c0_6 = arith.constant 0 : index
    %c0_7 = arith.constant 0 : index
    %8 = vector.load %arg4[%c0_6, %c0_7] : memref<1x128xf32, #tpu.memory_space<vmem>>, vector<1x128xf32>
    %9 = vector.broadcast %8 : vector<1x128xf32> to vector<8x128xf32>
    %10 = arith.mulf %7, %9 : vector<8x128xf32>
    %cst_8 = arith.constant dense<0.000000e+00> : vector<8xf32>
    %11 = vector.multi_reduction <add>, %10, %cst_8 [1] : vector<8x128xf32> to vector<8xf32>
    %12 = vector.shape_cast %11 : vector<8xf32> to vector<8x1xf32>
    %c0_9 = arith.constant 0 : index
    %c0_10 = arith.constant 0 : index
    %13 = vector.load %arg5[%c0_9, %c0_10] : memref<1x1xf32, #tpu.memory_space<vmem>>, vector<1x1xf32>
    %14 = vector.broadcast %13 : vector<1x1xf32> to vector<8x1xf32>
    %15 = arith.addf %12, %14 : vector<8x1xf32>
    %c0_11 = arith.constant 0 : index
    %c0_12 = arith.constant 0 : index
    %16 = vector.load %arg6[%c0_11, %c0_12] : memref<8x1xf32, #tpu.memory_space<vmem>>, vector<8x1xf32>
    tpu.vector_store %arg6[%c0_11, %c0_12], %15 {strides = array<i32>} : memref<8x1xf32, #tpu.memory_space<vmem>>, vector<8x1xf32>,
    return
  }
  func.func @transform_0(%arg0: i32) -> (i32, i32) {
    %c0_i32 = arith.constant 0 : i32
    %c0_i32_0 = arith.constant 0 : i32
    return %arg0, %c0_i32 : i32, i32
  }
  func.func @transform_1(%arg0: i32) -> (i32, i32) {
    %c0_i32 = arith.constant 0 : i32
    %c0_i32_0 = arith.constant 0 : i32
    %c0_i32_1 = arith.constant 0 : i32
    return %c0_i32, %c0_i32_0 : i32, i32
  }
  func.func @transform_2(%arg0: i32) -> (i32, i32) {
    %c0_i32 = arith.constant 0 : i32
    %c0_i32_0 = arith.constant 0 : i32
    %c0_i32_1 = arith.constant 0 : i32
    return %c0_i32, %c0_i32_0 : i32, i32
  }
  func.func @transform_3(%arg0: i32) -> (i32, i32) {
    %c0_i32 = arith.constant 0 : i32
    %c0_i32_0 = arith.constant 0 : i32
    %c0_i32_1 = arith.constant 0 : i32
    return %c0_i32, %c0_i32_0 : i32, i32
  }
  func.func @transform_4(%arg0: i32) -> (i32, i32) {
    %c0_i32 = arith.constant 0 : i32
    %c0_i32_0 = arith.constant 0 : i32
    %c0_i32_1 = arith.constant 0 : i32
    return %c0_i32, %c0_i32_0 : i32, i32
  }
  func.func @transform_5(%arg0: i32) -> (i32, i32) {
    %c0_i32 = arith.constant 0 : i32
    %c0_i32_0 = arith.constant 0 : i32
    return %arg0, %c0_i32 : i32, i32
  }
}

</mosaic_0001>

<bundles_post_ra>
// kernel: tpu_custom_call.1
= control target key start
LH: loop header
LB: loop body
LE: loop exit
PB: predicated region body
PF: predicated region fallthrough
CT: control target
= control target key end

     0   :  { %s324_s0 = inlined_call_operand.hbm [shape: f32[8,256], index: 0, kind: input, shape index: {}]   ;;  %s325_s1 = inlined_call_operand.hbm [shape: f32[256,128], index: 1, kind: input, shape index: {}]   ;;  %s326_s2 = inlined_call_operand.vmem [shape: f32[1,128], index: 2, kind: input, shape index: {}]   ;;  %s327_s3 = inlined_call_operand.vmem [shape: f32[1,128], index: 3, kind: input, shape index: {}]   ;;  %s328_s4 = inlined_call_operand.<no memory space> [shape: f32[1,1], index: 4, kind: input, shape index: {}]   ;;  %s329_s5 = inlined_call_operand.vmem [shape: f32[8,1], index: 5, kind: output, shape index: {}]  }
   0x1   :  { %v10_v0 = vstv %s328_s4 }
   0x2   :  { %11 = vst [vmem:[#allocation2] sm:$0x1] %v10_v0 }
   0x3   :  { %12 = vsyncpa [#allocation4], 0 }
   0x4   :  { %13 = vsyncpa [#allocation6], 0  ;;  %s272_s20 = smov [#allocation3]   ;;  %s273_s22 = smov [#allocation5]  }
   0x5   :  { %s20_s21 = sshll.u32 %s272_s20, 4  ;;  %s29_s23 = sshll.u32 %s273_s22, 4  ;;  %s21_s21 = int_to_ptr.vmem [resolvable:$true] %s20_s21  ;;  %s30_s23 = int_to_ptr.vmem [resolvable:$true] %s29_s23 }
   0x6   :  { %s236_s24 = scalar_lea.vmem %s21_s21, 256  ;;  %p241_p1 = scmp.lt.s32.totalorder %s21_s21, %s21_s21 }
   0x7   :  { %p237_p0 = scmp.ne.s32.totalorder %s21_s21, %s236_s24  ;;  %p242_p2 = scmp.lt.s32.totalorder %s236_s24, %s236_s24 }
   0x9   :  { %p243_p3 = por %p242_p2, %p241_p1 }
   0xb   :  { %p244_p4 = pnand %p243_p3, %p237_p0 }
   0xd   :  { %247 = shalt.err (!%p244_p4)
}
   0xe   :  { %23 = dma.hbm_to_vmem [thread:$0]  %s324_s0, 256, %s21_s21, [#allocation4]  }
   0xf   :  { %s256_s4 = scalar_lea.vmem %s30_s23, 4096  ;;  %p261_p6 = scmp.lt.s32.totalorder %s30_s23, %s30_s23 }
  0x10   :  { %p257_p5 = scmp.ne.s32.totalorder %s30_s23, %s256_s4  ;;  %p262_p7 = scmp.lt.s32.totalorder %s256_s4, %s256_s4 }
  0x12   :  { %p263_p8 = por %p262_p7, %p261_p6 }
  0x14   :  { %p264_p9 = pnand %p263_p8, %p257_p5 }
  0x16   :  { %267 = shalt.err (!%p264_p9)
}
  0x17   :  { %s274_s27 = smov 128   ;;  %s275_s28 = smov 8  }
  0x18   :  { %35 = dma.hbm_to_vmem [thread:$0]  %s325_s1, 4096, %s30_s23, [#allocation6], %s274_s27, %s274_s27, %s275_s28  }
  0x19   :  { %268 = dma.done.wait [#allocation4], 256  }
  0x1a   :  { %269 = vsyncadd [#allocation4], 4294967040 }
  0x1b   :  { %270 = dma.done.wait [#allocation6], 4096  }
  0x1c   :  { %271 = vsyncadd [#allocation6], 4294963200  ;;  %v81_v1 = vld [vmem:[#allocation5 + $0xf8] sm:$0xff]  ;;  %v80_v3 = vld [vmem:[#allocation5 + $0xf0] sm:$0xff]  ;;  %vm178_vm0 = vcmask 7168  }
  0x1d   :  { %v65_v2 = vld [vmem:[#allocation5 + $0x78] sm:$0xff]  ;;  %189 = vmatprep.subr.mxu0 %v81_v1  ;;  %v64_v4 = vld [vmem:[#allocation5 + $0x70] sm:$0xff]  ;;  %v79_v5 = vld [vmem:[#allocation5 + $0xe8] sm:$0xff] }
  0x1e   :  { %190 = vmatpush3.msra.mxu0 %v65_v2  ;;  %v63_v6 = vld [vmem:[#allocation5 + $0x68] sm:$0xff]  ;;  %v78_v7 = vld [vmem:[#allocation5 + $0xe0] sm:$0xff]  ;;  %v77_v9 = vld [vmem:[#allocation5 + $0xd8] sm:$0xff] }
  0x1f   :  { %191 = vmatprep.subr.mxu0 %v80_v3  ;;  %v62_v8 = vld [vmem:[#allocation5 + $0x60] sm:$0xff]  ;;  %v61_v10 = vld [vmem:[#allocation5 + $0x58] sm:$0xff]  ;;  %v76_v11 = vld [vmem:[#allocation5 + $0xd0] sm:$0xff] }
  0x20   :  { %192 = vmatpush3.msra.mxu0 %v64_v4  ;;  %v60_v12 = vld [vmem:[#allocation5 + $0x50] sm:$0xff]  ;;  %v75_v13 = vld [vmem:[#allocation5 + $0xc8] sm:$0xff]  ;;  %v49_v14 = vld [vmem:[#allocation3 + $0x8] sm:$0xff] }
  0x21   :  { %193 = vmatprep.subr.mxu0 %v79_v5  ;;  %v59_v15 = vld [vmem:[#allocation5 + $0x48] sm:$0xff]  ;;  %153 = vmatprep.mubr.f32.mxu0 %v49_v14  ;;  %v74_v16 = vld [vmem:[#allocation5 + $0xc0] sm:$0xff]  ;;  %v73_v18 = vld [vmem:[#allocation5 + $0xb8] sm:$0xff] }
  0x22   :  { %194 = vmatpush3.msra.mxu0 %v63_v6  ;;  %v58_v17 = vld [vmem:[#allocation5 + $0x40] sm:$0xff]  ;;  %v57_v19 = vld [vmem:[#allocation5 + $0x38] sm:$0xff]  ;;  %v72_v20 = vld [vmem:[#allocation5 + $0xb0] sm:$0xff] }
  0x23   :  { %195 = vmatprep.subr.mxu0 %v78_v7  ;;  %v56_v21 = vld [vmem:[#allocation5 + $0x30] sm:$0xff]  ;;  %v71_v22 = vld [vmem:[#allocation5 + $0xa8] sm:$0xff]  ;;  %v70_v24 = vld [vmem:[#allocation5 + $0xa0] sm:$0xff] }
  0x24   :  { %196 = vmatpush3.msra.mxu0 %v62_v8  ;;  %v55_v23 = vld [vmem:[#allocation5 + $0x28] sm:$0xff]  ;;  %v54_v25 = vld [vmem:[#allocation5 + $0x20] sm:$0xff]  ;;  %v69_v26 = vld [vmem:[#allocation5 + $0x98] sm:$0xff] }
  0x25   :  { %197 = vmatprep.subr.mxu0 %v77_v9  ;;  %v53_v27 = vld [vmem:[#allocation5 + $0x18] sm:$0xff]  ;;  %v68_v28 = vld [vmem:[#allocation5 + $0x90] sm:$0xff]  ;;  %v67_v30 = vld [vmem:[#allocation5 + $0x88] sm:$0xff] }
  0x26   :  { %198 = vmatpush3.msra.mxu0 %v61_v10  ;;  %v52_v29 = vld [vmem:[#allocation5 + $0x10] sm:$0xff]  ;;  %v51_v31 = vld [vmem:[#allocation5 + $0x8] sm:$0xff]  ;;  %v66_v32 = vld [vmem:[#allocation5 + $0x80] sm:$0xff] }
  0x27   :  { %199 = vmatprep.subr.mxu0 %v76_v11  ;;  %v50_v33 = vld [vmem:[#allocation5] sm:$0xff]  ;;  %v48_v34 = vld [vmem:[#allocation3] sm:$0xff]  ;;  %v186_v37 = vld [vmem:[%s326_s2] ss:$0 sm:$0xff] }
  0x28   :  { %200 = vmatpush3.msra.mxu0 %v60_v12  ;;  %v187_v40 = vld [vmem:[%s327_s3] ss:$0 sm:$0xff] }
  0x29   :  { %201 = vmatprep.subr.mxu0 %v75_v13  ;;  %v188_v43 = vld [vmem:[#allocation2] ss:$0 sm:$0xff] }
  0x2a   :  { %202 = vmatpush3.msra.mxu0 %v59_v15 }
  0x2b   :  { %203 = vmatprep.subr.mxu0 %v74_v16 }
  0x2c   :  { %204 = vmatpush3.msra.mxu0 %v58_v17 }
  0x2d   :  { %205 = vmatprep.subr.mxu0 %v73_v18 }
  0x2e   :  { %206 = vmatpush3.msra.mxu0 %v57_v19 }
  0x2f   :  { %207 = vmatprep.subr.mxu0 %v72_v20 }
  0x30   :  { %208 = vmatpush3.msra.mxu0 %v56_v21 }
  0x31   :  { %209 = vmatprep.subr.mxu0 %v71_v22 }
  0x32   :  { %210 = vmatpush3.msra.mxu0 %v55_v23 }
  0x33   :  { %211 = vmatprep.subr.mxu0 %v70_v24 }
  0x34   :  { %212 = vmatpush3.msra.mxu0 %v54_v25 }
  0x35   :  { %213 = vmatprep.subr.mxu0 %v69_v26 }
  0x36   :  { %214 = vmatpush3.msra.mxu0 %v53_v27 }
  0x37   :  { %215 = vmatprep.subr.mxu0 %v68_v28 }
  0x38   :  { %216 = vmatpush3.msra.mxu0 %v52_v29 }
  0x39   :  { %217 = vmatprep.subr.mxu0 %v67_v30 }
  0x3a   :  { %218 = vmatpush3.msra.mxu0 %v51_v31 }
  0x3b   :  { %219 = vmatprep.subr.mxu0 %v66_v32 }
  0x3c   :  { %220 = vmatpush3.msra.mxu0 %v50_v33 }
  0x3d   :  { %154 = vmatmul.mubr.f32.vlgmr.msra.gmra.mxu0 %v48_v34 }
  0xfd   :  { %v221_v35 = vpop.f32.mrf.mxu0 }
  0xff   :  { %v222_v36 = vpop.f32.mrf.mxu0 }
 0x100   :  { %v223_v38 = vadd.f32 %v222_v36, %v221_v35 }
 0x102   :  { %v156_v39 = vadd.f32 %v223_v38, %v186_v37 }
 0x104   :  { %v159_v41 = vmax.f32 %v156_v39, 0.0 }
 0x106   :  { %v167_v42 = vmul.f32 %v187_v40, %v159_v41 }
 0x108   :  { %168 = vadd.xlane.f32.xlu0 %v167_v42 }
 0x191   :  { %v169_v44 = vpop.xlane.xlu0 %168 }
 0x192   :  { %v177_v45 = vadd.f32 %v188_v43, %v169_v44 }
 0x194   :  { %179 = vst.msk [vmem:[%s329_s5] sm:$0xff] %vm178_vm0, %v177_v45 }
 0x195   :  { %184 = vsyncpa [#allocation4], 1 }
 0x196   :  { %185 = vsyncpa [#allocation6], 1 }

</bundles_post_ra>
